<compile_context>
chip_gen: v7x
topology: tpu7x:2x2x1
jax: 0.10.0
libtpu: 0.0.40
codegen_flags: <defaults>
</compile_context>

<pallas_src>
import functools

import jax
import jax.numpy as jnp
from jax.experimental import pallas as pl
from jax.experimental.pallas import tpu as pltpu


# ---------------------------------------------------------------------------
# Fused whole-problem kernels (small graphs: everything resident in VMEM).
# ---------------------------------------------------------------------------

def _latgcn_train_fused_kernel(x_ref, adj_ref, w1_ref, w2_ref, zeta_ref,
                               logit_ref, reg_ref, *, eta):
    """logit = adj @ (relu(adj @ (x@W1)) @ W2);  reg = ||adj @ (zeta_c@W2)||_F."""
    f32 = jnp.float32
    bf16 = jnp.bfloat16
    adj = adj_ref[...]                                          # bf16 [N, N]
    n = adj.shape[0]
    c = logit_ref.shape[1]

    # conv1: h = relu(adj @ (x @ W1))          (dropout treated as identity)
    xw1 = jnp.dot(x_ref[...], w1_ref[...], preferred_element_type=f32)
    h = jnp.maximum(
        jnp.dot(adj, xw1.astype(bf16), preferred_element_type=f32), 0.0)

    # zeta clip factor (f32 per row): eta / ||zeta||_2.
    # NOTE: matches torch clip_by_norm exactly — an all-zero zeta row -> inf/NaN.
    z = zeta_ref[...]
    scale = eta * jax.lax.rsqrt(jnp.sum(z * z, axis=1, keepdims=True))

    # ONE W2 matmul for both paths (diag row-scaling commutes with the matmul).
    hz = jnp.concatenate([h.astype(bf16), z.astype(bf16)], axis=0)   # [2N, H]
    hzw2 = jnp.dot(hz, w2_ref[...], preferred_element_type=f32)      # [2N, C]
    hw2 = hzw2[:n]
    zw2 = hzw2[n:] * scale

    # ONE adj matmul for both paths (shared LHS, column-stacked RHS).
    stacked = jnp.concatenate([hw2, zw2], axis=1).astype(bf16)       # [N, 2C]
    out = jnp.dot(adj, stacked, preferred_element_type=f32)          # [N, 2C]

    logit_ref[...] = out[:, :c].astype(logit_ref.dtype)
    delta = out[:, c:]
    reg_ref[0] = jnp.sqrt(jnp.sum(delta * delta))


def _latgcn_infer_fused_kernel(x_ref, adj_ref, w1_ref, w2_ref, logit_ref):
    """Eval forward: logit only."""
    f32 = jnp.float32
    bf16 = jnp.bfloat16
    adj = adj_ref[...]
    xw1 = jnp.dot(x_ref[...], w1_ref[...], preferred_element_type=f32)
    h = jnp.maximum(
        jnp.dot(adj, xw1.astype(bf16), preferred_element_type=f32), 0.0)
    hw2 = jnp.dot(h.astype(bf16), w2_ref[...], preferred_element_type=f32)
    logit_ref[...] = jnp.dot(adj, hw2.astype(bf16),
                             preferred_element_type=f32).astype(logit_ref.dtype)


# ---------------------------------------------------------------------------
# Tiled kernels (larger graphs: grid over adj row/col blocks).
# ---------------------------------------------------------------------------

def _row_matmul_kernel(lhs_ref, rhs_ref, o_ref):
    """o = lhs @ rhs for one row block (rhs = full small weight)."""
    o_ref[...] = jnp.dot(lhs_ref[...], rhs_ref[...],
                         preferred_element_type=jnp.float32).astype(o_ref.dtype)


def _adj_acc_kernel(adj_ref, rhs_ref, o_ref, acc_ref, *, relu):
    """o[i] = act( sum_k adj[i,k] @ rhs[k] ), accumulated over the k grid axis."""
    @pl.when(pl.program_id(1) == 0)
    def _():
        acc_ref[...] = jnp.zeros_like(acc_ref)

    acc_ref[...] += jnp.dot(adj_ref[...], rhs_ref[...],
                            preferred_element_type=jnp.float32)

    @pl.when(pl.program_id(1) == pl.num_programs(1) - 1)
    def _():
        acc = acc_ref[...]
        if relu:
            acc = jnp.maximum(acc, 0.0)
        o_ref[...] = acc.astype(o_ref.dtype)


def _stack_w2_kernel(h_ref, zeta_ref, w2_ref, st_ref, *, eta):
    """st = [h @ W2 | zeta_c @ W2] for one row block (one MXU pass over W2)."""
    bf16 = jnp.bfloat16
    h = h_ref[...]                                              # bf16 (bm, H)
    z = zeta_ref[...]                                           # f32  (bm, H)
    bm = h.shape[0]
    scale = eta * jax.lax.rsqrt(jnp.sum(z * z, axis=1, keepdims=True))
    hz = jnp.concatenate([h, z.astype(bf16)], axis=0)           # (2*bm, H)
    hzw2 = jnp.dot(hz, w2_ref[...], preferred_element_type=jnp.float32)
    st = jnp.concatenate([hzw2[:bm], hzw2[bm:] * scale], axis=1)
    st_ref[...] = st.astype(st_ref.dtype)


def _adj_out_kernel(adj_ref, st_ref, logit_ref, dsq_ref, acc_ref):
    """acc += adj_blk @ st_blk; finalize -> logit rows + per-row sumsq(delta)."""
    @pl.when(pl.program_id(1) == 0)
    def _():
        acc_ref[...] = jnp.zeros_like(acc_ref)

    acc_ref[...] += jnp.dot(adj_ref[...], st_ref[...],
                            preferred_element_type=jnp.float32)

    @pl.when(pl.program_id(1) == pl.num_programs(1) - 1)
    def _():
        acc = acc_ref[...]
        c = logit_ref.shape[1]
        logit_ref[...] = acc[:, :c].astype(logit_ref.dtype)
        delta = acc[:, c:]
        dsq_ref[...] = jnp.sum(delta * delta, axis=1, keepdims=True)


# ---------------------------------------------------------------------------
# Wrappers.
# ---------------------------------------------------------------------------

def _fused_forward(x, adj, w1, w2, zeta, *, eta, training):
    N, F = x.shape
    H = w1.shape[1]
    C = w2.shape[1]
    bf16 = jnp.bfloat16
    x_b, adj_b, w1_b, w2_b = (a.astype(bf16) for a in (x, adj, w1, w2))
    vmem = lambda: pl.BlockSpec(memory_space=pltpu.MemorySpace.VMEM)

    if not training:
        flops = 2 * N * F * H + 2 * N * N * H + 2 * N * H * C + 2 * N * N * C
        cost = pl.CostEstimate(
            flops=flops, transcendentals=0,
            bytes_accessed=2 * (x.size + adj.size + w1.size + w2.size) + 4 * N * C)
        return pl.pallas_call(
            _latgcn_infer_fused_kernel,
            out_shape=jax.ShapeDtypeStruct((N, C), jnp.float32),
            in_specs=[vmem() for _ in range(4)],
            out_specs=vmem(),
            cost_estimate=cost,
        )(x_b, adj_b, w1_b, w2_b)

    flops = (2 * N * F * H + 2 * N * N * H
             + 2 * (2 * N) * H * C + 2 * N * N * (2 * C))
    cost = pl.CostEstimate(
        flops=flops, transcendentals=N + 1,
        bytes_accessed=(2 * (x.size + adj.size + w1.size + w2.size)
                        + 4 * (zeta.size + N * C + 1)))
    logit, reg = pl.pallas_call(
        functools.partial(_latgcn_train_fused_kernel, eta=eta),
        out_shape=(jax.ShapeDtypeStruct((N, C), jnp.float32),
                   jax.ShapeDtypeStruct((1,), jnp.float32)),
        in_specs=[vmem() for _ in range(5)],
        out_specs=(vmem(), pl.BlockSpec(memory_space=pltpu.MemorySpace.SMEM)),
        cost_estimate=cost,
    )(x_b, adj_b, w1_b, w2_b, zeta)
    return logit, reg[0]


def _tiled_forward(x, adj, w1, w2, zeta, *, eta, training, bm, bk):
    N, F = x.shape
    H = w1.shape[1]
    C = w2.shape[1]
    assert N % bm == 0 and N % bk == 0, "tiled path needs divisible blocks"
    bf16 = jnp.bfloat16
    x_b, adj_b, w1_b, w2_b = (a.astype(bf16) for a in (x, adj, w1, w2))
    par = pltpu.CompilerParams(dimension_semantics=("parallel",))
    par_arb = pltpu.CompilerParams(
        dimension_semantics=("parallel", "arbitrary"))
    # TODO(synk): raise vmem_limit_bytes + pick larger per-generation tiles
    # (v7x 64 MiB VMEM / v6e 128 MiB / v5e 128 MiB) and skip zero adj blocks
    # via PrefetchScalarGridSpec for realistic sparse graphs.

    # 1) xw1 = x @ W1   (independent row blocks -> "parallel")
    xw1 = pl.pallas_call(
        _row_matmul_kernel,
        out_shape=jax.ShapeDtypeStruct((N, H), bf16),
        grid=(N // bm,),
        in_specs=[pl.BlockSpec((bm, F), lambda i: (i, 0)),
                  pl.BlockSpec((F, H), lambda i: (0, 0))],
        out_specs=pl.BlockSpec((bm, H), lambda i: (i, 0)),
        compiler_params=par,
    )(x_b, w1_b)

    # 2) h = relu(adj @ xw1)   (reduction over adj col blocks -> "arbitrary")
    h = pl.pallas_call(
        functools.partial(_adj_acc_kernel, relu=True),
        out_shape=jax.ShapeDtypeStruct((N, H), bf16),
        grid=(N // bm, N // bk),
        in_specs=[pl.BlockSpec((bm, bk), lambda i, k: (i, k)),
                  pl.BlockSpec((bk, H), lambda i, k: (k, 0))],
        out_specs=pl.BlockSpec((bm, H), lambda i, k: (i, 0)),
        scratch_shapes=[pltpu.VMEM((bm, H), jnp.float32)],
        compiler_params=par_arb,
    )(adj_b, xw1)

    if not training:
        hw2 = pl.pallas_call(
            _row_matmul_kernel,
            out_shape=jax.ShapeDtypeStruct((N, C), bf16),
            grid=(N // bm,),
            in_specs=[pl.BlockSpec((bm, H), lambda i: (i, 0)),
                      pl.BlockSpec((H, C), lambda i: (0, 0))],
            out_specs=pl.BlockSpec((bm, C), lambda i: (i, 0)),
            compiler_params=par,
        )(h, w2_b)
        return pl.pallas_call(
            functools.partial(_adj_acc_kernel, relu=False),
            out_shape=jax.ShapeDtypeStruct((N, C), jnp.float32),
            grid=(N // bm, N // bk),
            in_specs=[pl.BlockSpec((bm, bk), lambda i, k: (i, k)),
                      pl.BlockSpec((bk, C), lambda i, k: (k, 0))],
            out_specs=pl.BlockSpec((bm, C), lambda i, k: (i, 0)),
            scratch_shapes=[pltpu.VMEM((bm, C), jnp.float32)],
            compiler_params=par_arb,
        )(adj_b, hw2)

    # 3) st = [h@W2 | zeta_c@W2]   (one W2 pass per row block)
    st = pl.pallas_call(
        functools.partial(_stack_w2_kernel, eta=eta),
        out_shape=jax.ShapeDtypeStruct((N, 2 * C), bf16),
        grid=(N // bm,),
        in_specs=[pl.BlockSpec((bm, H), lambda i: (i, 0)),
                  pl.BlockSpec((bm, H), lambda i: (i, 0)),
                  pl.BlockSpec((H, C), lambda i: (0, 0))],
        out_specs=pl.BlockSpec((bm, 2 * C), lambda i: (i, 0)),
        compiler_params=par,
    )(h, zeta, w2_b)

    # 4) out = adj @ st ; logit = out[:, :C]; reg partials from out[:, C:]
    logit, dsq = pl.pallas_call(
        _adj_out_kernel,
        out_shape=(jax.ShapeDtypeStruct((N, C), jnp.float32),
                   jax.ShapeDtypeStruct((N, 1), jnp.float32)),
        grid=(N // bm, N // bk),
        in_specs=[pl.BlockSpec((bm, bk), lambda i, k: (i, k)),
                  pl.BlockSpec((bk, 2 * C), lambda i, k: (k, 0))],
        out_specs=(pl.BlockSpec((bm, C), lambda i, k: (i, 0)),
                   pl.BlockSpec((bm, 1), lambda i, k: (i, 0))),
        scratch_shapes=[pltpu.VMEM((bm, 2 * C), jnp.float32)],
        compiler_params=par_arb,
    )(adj_b, st)
    reg = jnp.sqrt(jnp.sum(dsq))
    return logit, reg


def latgcn_forward(x, adj, w1, w2, zeta=None, *, eta=0.1, training=True,
                   block_rows=None, block_cols=None):
    """LATGCN forward. Training returns (logit, reg_loss); eval returns logit."""
    N = x.shape[0]
    if block_rows is None:
        use_tiled = N >= 1024
        block_rows, block_cols = 256, 256
    else:
        use_tiled = True
        block_cols = block_cols or block_rows
    if use_tiled and N % block_rows == 0 and N % block_cols == 0:
        return _tiled_forward(x, adj, w1, w2, zeta, eta=eta, training=training,
                              bm=block_rows, bk=block_cols)
    return _fused_forward(x, adj, w1, w2, zeta, eta=eta, training=training)


def latgcn_reference(x, adj, w1, w2, zeta, *, eta=0.1):
    """Pure-JAX f32 reference, written the 'long way' (explicit third GCN pass)."""
    h = jnp.maximum(adj @ (x @ w1), 0.0)
    logit = adj @ (h @ w2)
    zc = zeta * eta / jnp.linalg.norm(zeta, axis=1, keepdims=True)
    hp = h + zc
    logitp = adj @ (hp @ w2)
    reg = jnp.linalg.norm(logitp - logit)
    return logit, reg


def _rel_err(a, b):
    return float(jnp.max(jnp.abs(a - b)) / (jnp.max(jnp.abs(b)) + 1e-12))


# --------------------------------------------------------------------- main --

if __name__ == "__main__":
    eta = 0.1
    key = jax.random.PRNGKey(0)
    TOL = 4e-2  # bf16 MXU operands, f32 accumulation

    def make_inputs(k, N, F, H, C):
        kx, ka, kw1, kw2, kz = jax.random.split(k, 5)
        x = jax.random.normal(kx, (N, F), dtype=jnp.float32)
        # Deterministic dense "normalized" adjacency: symmetric + self-loops,
        # row-normalized.
        a = jax.random.uniform(ka, (N, N), dtype=jnp.float32)
        a = 0.5 * (a + a.T) + jnp.eye(N, dtype=jnp.float32)
        adj = a / jnp.sum(a, axis=1, keepdims=True)
        w1 = jax.random.normal(kw1, (F, H), dtype=jnp.float32) * 0.1
        w2 = jax.random.normal(kw2, (H, C), dtype=jnp.float32) * 0.1
        zeta = jax.random.normal(kz, (N, H), dtype=jnp.float32)
        return x, adj, w1, w2, zeta

    k0, k1 = jax.random.split(key)

    # --- small graph: single fused whole-problem kernel ----------------------
    N, F, H, C = 64, 32, 16, 8
    x, adj, w1, w2, zeta = make_inputs(k0, N, F, H, C)
    logit, reg = jax.block_until_ready(
        latgcn_forward(x, adj, w1, w2, zeta, eta=eta, training=True))
    logit_eval = jax.block_until_ready(
        latgcn_forward(x, adj, w1, w2, zeta, eta=eta, training=False))
    logit_ref, reg_ref = latgcn_reference(x, adj, w1, w2, zeta, eta=eta)
    assert logit.shape == (N, C) and logit.dtype == jnp.float32
    assert _rel_err(logit, logit_ref) < TOL
    assert _rel_err(logit_eval, logit_ref) < TOL
    assert abs(float(reg) - float(reg_ref)) / float(reg_ref) < TOL

    # --- larger graph: tiled path (grid over adj row/col blocks) -------------
    N2, F2 = 512, 64
    x, adj, w1, w2, zeta = make_inputs(k1, N2, F2, H, C)
    logit_t, reg_t = jax.block_until_ready(
        latgcn_forward(x, adj, w1, w2, zeta, eta=eta, training=True,
                       block_rows=256, block_cols=256))
    logit_te = jax.block_until_ready(
        latgcn_forward(x, adj, w1, w2, zeta, eta=eta, training=False,
                       block_rows=256, block_cols=256))
    logit_ref, reg_ref = latgcn_reference(x, adj, w1, w2, zeta, eta=eta)
    assert logit_t.shape == (N2, C) and logit_t.dtype == jnp.float32
    assert _rel_err(logit_t, logit_ref) < TOL
    assert _rel_err(logit_te, logit_ref) < TOL
    assert abs(float(reg_t) - float(reg_ref)) / float(reg_ref) < TOL

    print("KERNEL_OK")
</pallas_src>

<mosaic_0001>
module attributes {stable_mosaic.version = 11 : i64} {
  func.func @_latgcn_train_fused_kernel(%arg0: memref<64x32xbf16, #tpu.memory_space<vmem>>, %arg1: memref<64x64xbf16, #tpu.memory_space<vmem>>, %arg2: memref<32x16xbf16, #tpu.memory_space<vmem>>, %arg3: memref<16x8xbf16, #tpu.memory_space<vmem>>, %arg4: memref<64x16xf32, #tpu.memory_space<vmem>>, %arg5: memref<64x8xf32, #tpu.memory_space<vmem>>, %arg6: memref<1xf32, #tpu.memory_space<smem>>) attributes {dimension_semantics = [], scalar_prefetch = 0 : i64, scratch_operands = 0 : i64, tpu.core_type = #tpu.core_type<tc>} {
    %c0 = arith.constant 0 : index
    %c0_0 = arith.constant 0 : index
    %0 = vector.load %arg1[%c0, %c0_0] : memref<64x64xbf16, #tpu.memory_space<vmem>>, vector<64x64xbf16>
    %c0_1 = arith.constant 0 : index
    %c0_2 = arith.constant 0 : index
    %1 = vector.load %arg0[%c0_1, %c0_2] : memref<64x32xbf16, #tpu.memory_space<vmem>>, vector<64x32xbf16>
    %c0_3 = arith.constant 0 : index
    %c0_4 = arith.constant 0 : index
    %2 = vector.load %arg2[%c0_3, %c0_4] : memref<32x16xbf16, #tpu.memory_space<vmem>>, vector<32x16xbf16>
    %cst = arith.constant dense<0.000000e+00> : vector<64x16xf32>
    %3 = tpu.matmul %1, %2, %cst {dimension_numbers = #tpu.dot_dimension_numbers<[1], [0], [0], [1], [0, 0, 1, 1], [], []>} : vector<64x32xbf16>, vector<32x16xbf16>, vector<64x16xf32> -> vector<64x16xf32>
    %4 = arith.truncf %3 : vector<64x16xf32> to vector<64x16xbf16>
    %cst_5 = arith.constant dense<0.000000e+00> : vector<64x16xf32>
    %5 = tpu.matmul %0, %4, %cst_5 {dimension_numbers = #tpu.dot_dimension_numbers<[1], [0], [0], [1], [0, 0, 1, 1], [], []>} : vector<64x64xbf16>, vector<64x16xbf16>, vector<64x16xf32> -> vector<64x16xf32>
    %cst_6 = arith.constant 0.000000e+00 : f32
    %6 = vector.broadcast %cst_6 : f32 to vector<64x16xf32>
    %7 = arith.maximumf %5, %6 : vector<64x16xf32>
    %c0_7 = arith.constant 0 : index
    %c0_8 = arith.constant 0 : index
    %8 = vector.load %arg4[%c0_7, %c0_8] : memref<64x16xf32, #tpu.memory_space<vmem>>, vector<64x16xf32>
    %9 = arith.mulf %8, %8 : vector<64x16xf32>
    %cst_9 = arith.constant dense<0.000000e+00> : vector<64xf32>
    %10 = vector.multi_reduction <add>, %9, %cst_9 [1] : vector<64x16xf32> to vector<64xf32>
    %11 = vector.shape_cast %10 : vector<64xf32> to vector<64x1xf32>
    %12 = math.rsqrt %11 : vector<64x1xf32>
    %cst_10 = arith.constant 1.000000e-01 : f32
    %13 = vector.broadcast %cst_10 : f32 to vector<64x1xf32>
    %14 = arith.mulf %13, %12 : vector<64x1xf32>
    %15 = arith.truncf %7 : vector<64x16xf32> to vector<64x16xbf16>
    %16 = arith.truncf %8 : vector<64x16xf32> to vector<64x16xbf16>
    %17 = tpu.concatenate %15, %16 in 0 : vector<64x16xbf16>, vector<64x16xbf16> -> vector<128x16xbf16>
    %c0_11 = arith.constant 0 : index
    %c0_12 = arith.constant 0 : index
    %18 = vector.load %arg3[%c0_11, %c0_12] : memref<16x8xbf16, #tpu.memory_space<vmem>>, vector<16x8xbf16>
    %cst_13 = arith.constant dense<0.000000e+00> : vector<128x8xf32>
    %19 = tpu.matmul %17, %18, %cst_13 {dimension_numbers = #tpu.dot_dimension_numbers<[1], [0], [0], [1], [0, 0, 1, 1], [], []>} : vector<128x16xbf16>, vector<16x8xbf16>, vector<128x8xf32> -> vector<128x8xf32>
    %20 = vector.extract_strided_slice %19 {offsets = [0, 0], sizes = [64, 8], strides = [1, 1]} : vector<128x8xf32> to vector<64x8xf32>
    %21 = vector.extract_strided_slice %19 {offsets = [64, 0], sizes = [64, 8], strides = [1, 1]} : vector<128x8xf32> to vector<64x8xf32>
    %22 = vector.broadcast %14 : vector<64x1xf32> to vector<64x8xf32>
    %23 = arith.mulf %21, %22 : vector<64x8xf32>
    %24 = tpu.concatenate %20, %23 in 1 : vector<64x8xf32>, vector<64x8xf32> -> vector<64x16xf32>
    %25 = arith.truncf %24 : vector<64x16xf32> to vector<64x16xbf16>
    %cst_14 = arith.constant dense<0.000000e+00> : vector<64x16xf32>
    %26 = tpu.matmul %0, %25, %cst_14 {dimension_numbers = #tpu.dot_dimension_numbers<[1], [0], [0], [1], [0, 0, 1, 1], [], []>} : vector<64x64xbf16>, vector<64x16xbf16>, vector<64x16xf32> -> vector<64x16xf32>
    %27 = vector.extract_strided_slice %26 {offsets = [0, 0], sizes = [64, 8], strides = [1, 1]} : vector<64x16xf32> to vector<64x8xf32>
    %c0_15 = arith.constant 0 : index
    %c0_16 = arith.constant 0 : index
    %28 = vector.load %arg5[%c0_15, %c0_16] : memref<64x8xf32, #tpu.memory_space<vmem>>, vector<64x8xf32>
    tpu.vector_store %arg5[%c0_15, %c0_16], %27 {strides = array<i32>} : memref<64x8xf32, #tpu.memory_space<vmem>>, vector<64x8xf32>,
    %29 = vector.extract_strided_slice %26 {offsets = [0, 8], sizes = [64, 8], strides = [1, 1]} : vector<64x16xf32> to vector<64x8xf32>
    %30 = arith.mulf %29, %29 : vector<64x8xf32>
    %31 = vector.shape_cast %30 : vector<64x8xf32> to vector<1x64x8xf32>
    %cst_17 = arith.constant dense<0.000000e+00> : vector<1xf32>
    %32 = vector.multi_reduction <add>, %31, %cst_17 [1, 2] : vector<1x64x8xf32> to vector<1xf32>
    %33 = vector.shape_cast %32 : vector<1xf32> to vector<1x1x1xf32>
    %34 = vector.extract %33[0, 0, 0] : f32 from vector<1x1x1xf32>
    %35 = math.sqrt %34 : f32
    %c0_18 = arith.constant 0 : index
    %36 = memref.load %arg6[%c0_18] : memref<1xf32, #tpu.memory_space<smem>>
    memref.store %35, %arg6[%c0_18] : memref<1xf32, #tpu.memory_space<smem>>
    return
  }
}

</mosaic_0001>

<bundles_post_ra>
// kernel: tpu_custom_call.1
= control target key start
LH: loop header
LB: loop body
LE: loop exit
PB: predicated region body
PF: predicated region fallthrough
CT: control target
= control target key end

     0   :  { %vm76_vm0 = vcmask 261120   ;;  %s1083_s0 = inlined_call_operand.vmem [shape: bf16[64,32], index: 0, kind: input, shape index: {}]   ;;  %s1084_s1 = inlined_call_operand.vmem [shape: bf16[64,64], index: 1, kind: input, shape index: {}]   ;;  %s1085_s2 = inlined_call_operand.vmem [shape: bf16[32,16], index: 2, kind: input, shape index: {}]   ;;  %s1086_s3 = inlined_call_operand.vmem [shape: bf16[16,8], index: 3, kind: input, shape index: {}]   ;;  %s1087_s4 = inlined_call_operand.vmem [shape: f32[64,16], index: 4, kind: input, shape index: {}]   ;;  %s1088_s5 = inlined_call_operand.vmem [shape: f32[64,8], index: 5, kind: output, shape index: {0}]   ;;  %s1089_s6 = inlined_call_operand.hbm [shape: f32[1], index: 6, kind: output, shape index: {1}]  }
   0x1   :  { %v827_v0 = vld [vmem:[%s1085_s2] sm:$0xff]   ;;  %v828_v1 = vld [vmem:[%s1085_s2 + $0x8] sm:$0xff]   ;;  %v831_v4 = vld [vmem:[%s1083_s0 + $0x10] sm:$0xff]  }
   0x2   :  { %738 = vmatprep.subr.bf16.mxu0 %v827_v0  ;;  %v829_v2 = vld [vmem:[%s1083_s0] sm:$0xff]   ;;  %v830_v3 = vld [vmem:[%s1083_s0 + $0x8] sm:$0xff]  }
   0x3   :  { %739 = vmatpush3.bf16.msra.mxu0 %v827_v0  ;;  %742 = vmatprep.mubr.msk.bf16.mxu0 %vm76_vm0, %v829_v2 }
   0x4   :  { %740 = vmatprep.subr.bf16.mxu0 %v828_v1 }
   0x7   :  { %741 = vmatpush3.bf16.msra.mxu0 %v828_v1 }
   0x8   :  { %12 = vsyncpa [#allocation3], 0  ;;  %v832_v5 = vld [vmem:[%s1083_s0 + $0x18] sm:$0xff]   ;;  %v833_v6 = vld [vmem:[%s1084_s1] sm:$0xff]   ;;  %vm178_vm1 = vcmask 523264   ;;  %vm280_vm2 = vcmask 130048  }
   0x9   :  { %758 = vmatprep.mubr.msk.bf16.mxu1 %vm178_vm1, %v833_v6  ;;  %v837_v7 = vld [vmem:[%s1086_s3] sm:$0xff]   ;;  %v934_v20 = vld [vmem:[%s1084_s1 + $0x8] sm:$0xff]   ;;  %v939_v21 = vld [vmem:[%s1084_s1 + $0x10] sm:$0xff]   ;;  %vm498_vm3 = vcmask 64512   ;;  %s869_s12 = smov 120   ;;  %s856_s23 = scalar_lea.hbm %s1089_s6, 16 }
   0xa   :  { %743 = vmatmul.mubr.msk.bf16.vlgmr.msra.gmra.mrb[0].mxu0 %vm76_vm0, %v830_v3  ;;  %766 = vmatprep.subr.bf16.mxu0 %v837_v7  ;;  %v948_v22 = vld [vmem:[%s1084_s1 + $0x18] sm:$0xff]   ;;  %v264_v23 = vld [vmem:[%s1087_s4] sm:$0xff]  ;;  %v265_v24 = vld [vmem:[%s1087_s4 + $0x8] sm:$0xff]  ;;  %p857_p0 = scmp.ne.s32.totalorder %s1089_s6, %s856_s23  ;;  %p860_p1 = scmp.lt.u32.totalorder %s856_s23, %s1089_s6 }
   0xb   :  { %746 = vmatprep.mubr.msk.bf16.mxu0 %vm76_vm0, %v831_v4  ;;  %767 = vmatpush3.bf16.msra.mxu0 %v837_v7  ;;  %v325_v25 = vpack.c.bf16 %v265_v24, %v264_v23  ;;  %v266_v26 = vld [vmem:[%s1087_s4 + $0x10] sm:$0xff]  ;;  %v267_v27 = vld [vmem:[%s1087_s4 + $0x18] sm:$0xff]  ;;  %v268_v29 = vld [vmem:[%s1087_s4 + $0x20] sm:$0xff]  ;;  %v272_v35 = vmul.f32 %v264_v23, %v264_v23  ;;  %v273_v37 = vmul.f32 %v265_v24, %v265_v24 }
   0xc   :  { %v326_v28 = vpack.c.bf16 %v267_v27, %v266_v26  ;;  %v269_v30 = vld [vmem:[%s1087_s4 + $0x28] sm:$0xff]  ;;  %v270_v32 = vld [vmem:[%s1087_s4 + $0x30] sm:$0xff]  ;;  %v271_v33 = vld [vmem:[%s1087_s4 + $0x38] sm:$0xff]  ;;  %v274_v36 = vmul.f32 %v266_v26, %v266_v26  ;;  %v275_v38 = vmul.f32 %v267_v27, %v267_v27  ;;  %v276_v43 = vmul.f32 %v268_v29, %v268_v29  ;;  %s868_s4 = smov 8   ;;  %p862_p2 = pnand %p860_p1, %p857_p0 }
   0xd   :  { %v327_v31 = vpack.c.bf16 %v269_v30, %v268_v29  ;;  %v328_v34 = vpack.c.bf16 %v271_v33, %v270_v32  ;;  %v281_v39 = vsel %vm280_vm2, %v272_v35, 0.0  ;;  %v284_v41 = vsel %vm280_vm2, %v273_v37, 0.0 }
   0xe   :  { %v287_v40 = vsel %vm280_vm2, %v274_v36, 0.0  ;;  %282 = vadd.xlane.f32.xlu0 %v281_v39  ;;  %v290_v42 = vsel %vm280_vm2, %v275_v38, 0.0  ;;  %v277_v44 = vmul.f32 %v269_v30, %v269_v30  ;;  %v293_v45 = vsel %vm280_vm2, %v276_v43, 0.0 }
   0xf   :  { %288 = vadd.xlane.f32.xlu1 %v287_v40  ;;  %v278_v47 = vmul.f32 %v270_v32, %v270_v32  ;;  %v279_v48 = vmul.f32 %v271_v33, %v271_v33 }
  0x10   :  { %v296_v46 = vsel %vm280_vm2, %v277_v44, 0.0 }
  0x11   :  { %v299_v49 = vsel %vm280_vm2, %v278_v47, 0.0  ;;  %v302_v50 = vsel %vm280_vm2, %v279_v48, 0.0 }
  0x12   :  { %747 = vmatmul.mubr.msk.bf16.gmra.mrb[4].mxu0 %vm76_vm0, %v832_v5  ;;  %285 = vadd.xlane.f32.xlu0 %v284_v41 }
  0x13   :  { %291 = vadd.xlane.f32.xlu1 %v290_v42 }
  0x16   :  { %294 = vadd.xlane.f32.xlu0 %v293_v45 }
  0x17   :  { %297 = vadd.xlane.f32.xlu1 %v296_v46 }
  0x1a   :  { %300 = vadd.xlane.f32.xlu0 %v299_v49 }
  0x1b   :  { %303 = vadd.xlane.f32.xlu1 %v302_v50 }
  0x9b   :  { %v283_v7 = vpop.xlane.xlu0 %282 }
  0xdd   :  { %v744_v8 = vpop.f32.mrb[0].mxu0 }
  0xde   :  { %v123_v9 = vpop.f32.mrb[1].mxu0 }
  0xdf   :  { %v745_v10 = vpop.f32.mrb[2].mxu0 }
  0xe0   :  { %v155_v11 = vpack.c.bf16 %v745_v10, %v744_v8  ;;  %v126_v12 = vpop.f32.mrb[3].mxu0  ;;  %v289_v8 = vpop.xlane.xlu1 %288 }
  0xe1   :  { %v154_v13 = vpack.c.bf16 %v126_v12, %v123_v9  ;;  %v286_v9 = vpop.xlane.xlu0 %285  ;;  %838 = vrsqrt.f32 %v289_v8 }
  0xe3   :  { %750 = vmatprep.subr.bf16.mxu1 %v154_v13 }
  0xe4   :  { %751 = vmatpush3.bf16.msra.mxu1 %v154_v13  ;;  %v292_v10 = vpop.xlane.xlu1 %291 }
  0xe5   :  { %v748_v14 = vpop.f32.mrb[4].mxu0  ;;  %752 = vmatprep.subr.bf16.mxu1 %v155_v11  ;;  %v295_v12 = vpop.xlane.xlu0 %294  ;;  %840 = vrsqrt.f32 %v292_v10 }
  0xe6   :  { %v139_v15 = vpop.f32.mrb[5].mxu0  ;;  %842 = vrsqrt.f32 %v286_v9 }
  0xe7   :  { %v749_v16 = vpop.f32.mrb[6].mxu0  ;;  %844 = vrsqrt.f32 %v283_v7 }
  0xe8   :  { %v157_v17 = vpack.c.bf16 %v749_v16, %v748_v14  ;;  %v142_v18 = vpop.f32.mrb[7].mxu0  ;;  %753 = vmatpush3.bf16.msra.mxu1 %v155_v11  ;;  %v298_v14 = vpop.xlane.xlu1 %297  ;;  %846 = vrsqrt.f32 %v295_v12 }
  0xe9   :  { %v156_v19 = vpack.c.bf16 %v142_v18, %v139_v15 }
  0xeb   :  { %754 = vmatprep.subr.bf16.mxu1 %v156_v19 }
  0xec   :  { %755 = vmatpush3.bf16.msra.mxu1 %v156_v19  ;;  %v304_v18 = vpop.xlane.xlu1 %303 }
  0xed   :  { %756 = vmatprep.subr.bf16.mxu1 %v157_v17 }
  0xf0   :  { %757 = vmatpush3.bf16.msra.mxu1 %v157_v17  ;;  %v301_v17 = vpop.xlane.xlu0 %300 }
  0xf1   :  { %848 = vrsqrt.f32 %v301_v17 }
  0xf2   :  { %850 = vrsqrt.f32 %v304_v18 }
  0xf3   :  { %759 = vmatmul.mubr.msk.bf16.vlgmr.msra.gmra.mrb[0].mxu1 %vm178_vm1, %v934_v20  ;;  %852 = vrsqrt.f32 %v298_v14 }
  0xf4   :  { %762 = vmatprep.mubr.msk.bf16.mxu1 %vm178_vm1, %v939_v21 }
  0xfb   :  { %763 = vmatmul.mubr.msk.bf16.gmra.mrb[4].mxu1 %vm178_vm1, %v948_v22 }
  0xfc   :  { %792 = vmatprep.mubr.msk.bf16.mxu1 %vm178_vm1, %v833_v6 }
 0x1c6   :  { %v760_v51 = vpop.f32.mrb[0].mxu1 }
 0x1c7   :  { %v225_v52 = vpop.f32.mrb[1].mxu1  ;;  %v258_v54 = vmax.f32 %v760_v51, 0.0 }
 0x1c8   :  { %v761_v53 = vpop.f32.mrb[2].mxu1  ;;  %v256_v57 = vmax.f32 %v225_v52, 0.0 }
 0x1c9   :  { %v259_v55 = vmax.f32 %v761_v53, 0.0  ;;  %v228_v56 = vpop.f32.mrb[3].mxu1 }
 0x1ca   :  { %v257_v58 = vmax.f32 %v228_v56, 0.0 }
 0x1cb   :  { %v322_v59 = vpack.c.bf16 %v259_v55, %v258_v54 }
 0x1cc   :  { %v321_v60 = vpack.c.bf16 %v257_v58, %v256_v57 }
 0x1ce   :  { %v764_v61 = vpop.f32.mrb[4].mxu1  ;;  %768 = vmatprep.mubr.msk.bf16.mxu0 %vm280_vm2, %v321_v60 }
 0x1cf   :  { %v241_v62 = vpop.f32.mrb[5].mxu1  ;;  %769 = vmatmul.mubr.msk.bf16.vlgmr.msra.gmra.mrb[8].mxu0 %vm280_vm2, %v322_v59  ;;  %v262_v0 = vmax.f32 %v764_v61, 0.0 }
 0x1d0   :  { %v765_v63 = vpop.f32.mrb[6].mxu1  ;;  %v260_v3 = vmax.f32 %v241_v62, 0.0 }
 0x1d1   :  { %v263_v1 = vmax.f32 %v765_v63, 0.0  ;;  %v244_v2 = vpop.f32.mrb[7].mxu1 }
 0x1d2   :  { %v261_v4 = vmax.f32 %v244_v2, 0.0 }
 0x1d3   :  { %v324_v5 = vpack.c.bf16 %v263_v1, %v262_v0 }
 0x1d4   :  { %v323_v6 = vpack.c.bf16 %v261_v4, %v260_v3 }
 0x1d6   :  { %772 = vmatprep.mubr.msk.bf16.mxu0 %vm280_vm2, %v323_v6 }
 0x1d7   :  { %773 = vmatmul.mubr.msk.bf16.gmra.mrb[12].mxu0 %vm280_vm2, %v324_v5 }
 0x1d8   :  { %776 = vmatprep.mubr.msk.bf16.mxu0 %vm280_vm2, %v325_v25  ;;  %v839_v25 = vpop.eup %838 }
 0x1d9   :  { %v841_v27 = vpop.eup %840  ;;  %v315_v30 = vmul.f32 0.1, %v839_v25 }
 0x1df   :  { %777 = vmatmul.mubr.msk.bf16.gmra.mrb[16].mxu0 %vm280_vm2, %v326_v28  ;;  %v843_v28 = vpop.eup %842 }
 0x1e0   :  { %780 = vmatprep.mubr.msk.bf16.mxu0 %vm280_vm2, %v327_v31  ;;  %v845_v29 = vpop.eup %844  ;;  %v316_v31 = vmul.f32 0.1, %v841_v27  ;;  %v314_v33 = vmul.f32 0.1, %v843_v28 }
 0x1e1   :  { %v847_v35 = vpop.eup %846  ;;  %v313_v36 = vmul.f32 0.1, %v845_v29 }
 0x1e2   :  { %v849_v38 = vpop.eup %848  ;;  %v317_v51 = vmul.f32 0.1, %v847_v35 }
 0x1e3   :  { %v851_v42 = vpop.eup %850  ;;  %v319_v48 = vmul.f32 0.1, %v849_v38 }
 0x1e4   :  { %v853_v45 = vpop.eup %852  ;;  %v320_v49 = vmul.f32 0.1, %v851_v42 }
 0x1e5   :  { %v318_v52 = vmul.f32 0.1, %v853_v45 }
 0x1e7   :  { %781 = vmatmul.mubr.msk.bf16.gmra.mrb[20].mxu0 %vm280_vm2, %v328_v34 }
 0x2a2   :  { %v993_v11 = vpop.f32.mrb[8].mxu0 }
 0x2a3   :  { %v995_v13 = vpop.f32.mrb[9].mxu0 }
 0x2a4   :  { %v997_v15 = vpop.f32.mrb[10].mxu0 }
 0x2a5   :  { %v999_v16 = vpop.f32.mrb[11].mxu0 }
 0x2aa   :  { %v1001_v19 = vpop.f32.mrb[12].mxu0 }
 0x2ab   :  { %v1003_v23 = vpop.f32.mrb[13].mxu0 }
 0x2ac   :  { %v1005_v24 = vpop.f32.mrb[14].mxu0 }
 0x2ad   :  { %v1007_v26 = vpop.f32.mrb[15].mxu0 }
 0x2b2   :  { %v778_v32 = vpop.f32.mrb[16].mxu0 }
 0x2b3   :  { %v427_v34 = vpop.f32.mrb[17].mxu0  ;;  %v460_v39 = vmul.f32 %v778_v32, %v315_v30 }
 0x2b4   :  { %v779_v37 = vpop.f32.mrb[18].mxu0  ;;  %v458_v43 = vmul.f32 %v427_v34, %v313_v36 }
 0x2b5   :  { %v461_v40 = vmul.f32 %v779_v37, %v316_v31  ;;  %v430_v41 = vpop.f32.mrb[19].mxu0 }
 0x2b6   :  { %v459_v44 = vmul.f32 %v430_v41, %v314_v33 }
 0x2b7   :  { %v812_v46 = vpack.i.bf16 %v461_v40, %v460_v39 }
 0x2b8   :  { %v807_v47 = vpack.i.bf16 %v459_v44, %v458_v43 }
 0x2b9   :  { %813 = vrot.lane.b32.xlu1 %v812_v46, %s868_s4 }
 0x2ba   :  { %808 = vrot.lane.b32.xlu0 %v807_v47, %s868_s4  ;;  %v782_v50 = vpop.f32.mrb[20].mxu0 }
 0x2bb   :  { %v443_v53 = vpop.f32.mrb[21].mxu0  ;;  %v464_v55 = vmul.f32 %v782_v50, %v319_v48 }
 0x2bc   :  { %v783_v54 = vpop.f32.mrb[22].mxu0  ;;  %v462_v58 = vmul.f32 %v443_v53, %v317_v51 }
 0x2bd   :  { %v465_v56 = vmul.f32 %v783_v54, %v320_v49  ;;  %v446_v57 = vpop.f32.mrb[23].mxu0 }
 0x2be   :  { %v463_v59 = vmul.f32 %v446_v57, %v318_v52 }
 0x2bf   :  { %v822_v60 = vpack.i.bf16 %v465_v56, %v464_v55 }
 0x2c0   :  { %v817_v61 = vpack.i.bf16 %v463_v59, %v462_v58 }
 0x2c2   :  { %818 = vrot.lane.b32.xlu1 %v817_v61, %s868_s4 }
 0x2c6   :  { %823 = vrot.lane.b32.xlu1 %v822_v60, %s868_s4 }
 0x32b   :  { %v814_v62 = vpop.permute.xlu1 %813 }
 0x32c   :  { %v816_v63 = vunpack.i.h.bf16 %v814_v62  ;;  %v815_v0 = vunpack.i.l.bf16 %v814_v62  ;;  %v809_v1 = vpop.permute.xlu0 %808 }
 0x32d   :  { %v811_v2 = vunpack.i.h.bf16 %v809_v1  ;;  %v810_v3 = vunpack.i.l.bf16 %v809_v1 }
 0x32e   :  { %v501_v4 = vsel %vm498_vm3, %v993_v11, %v815_v0  ;;  %v502_v5 = vsel %vm498_vm3, %v997_v15, %v816_v63 }
 0x32f   :  { %v499_v6 = vsel %vm498_vm3, %v995_v13, %v810_v3  ;;  %v500_v7 = vsel %vm498_vm3, %v999_v16, %v811_v2  ;;  %v508_v8 = vpack.c.bf16 %v502_v5, %v501_v4 }
 0x330   :  { %v507_v9 = vpack.c.bf16 %v500_v7, %v499_v6 }
 0x332   :  { %784 = vmatprep.subr.bf16.mxu1 %v507_v9 }
 0x333   :  { %785 = vmatpush3.bf16.msra.mxu1 %v507_v9 }
 0x334   :  { %786 = vmatprep.subr.bf16.mxu1 %v508_v8  ;;  %v819_v10 = vpop.permute.xlu1 %818 }
 0x335   :  { %v821_v12 = vunpack.i.h.bf16 %v819_v10  ;;  %v820_v14 = vunpack.i.l.bf16 %v819_v10 }
 0x337   :  { %787 = vmatpush3.bf16.msra.mxu1 %v508_v8  ;;  %v503_v11 = vsel %vm498_vm3, %v1003_v23, %v820_v14  ;;  %v504_v15 = vsel %vm498_vm3, %v1007_v26, %v821_v12 }
 0x338   :  { %v824_v17 = vpop.permute.xlu1 %823  ;;  %v509_v13 = vpack.c.bf16 %v504_v15, %v503_v11 }
 0x339   :  { %v826_v18 = vunpack.i.h.bf16 %v824_v17  ;;  %v825_v25 = vunpack.i.l.bf16 %v824_v17 }
 0x33a   :  { %788 = vmatprep.subr.bf16.mxu1 %v509_v13 }
 0x33b   :  { %789 = vmatpush3.bf16.msra.mxu1 %v509_v13  ;;  %v505_v16 = vsel %vm498_vm3, %v1001_v19, %v825_v25  ;;  %v506_v27 = vsel %vm498_vm3, %v1005_v24, %v826_v18 }
 0x33c   :  { %v510_v28 = vpack.c.bf16 %v506_v27, %v505_v16 }
 0x33e   :  { %790 = vmatprep.subr.bf16.mxu1 %v510_v28 }
 0x33f   :  { %791 = vmatpush3.bf16.msra.mxu1 %v510_v28 }
 0x342   :  { %793 = vmatmul.mubr.msk.bf16.vlgmr.msra.gmra.mrb[8].mxu1 %vm178_vm1, %v934_v20 }
 0x343   :  { %796 = vmatprep.mubr.msk.bf16.mxu1 %vm178_vm1, %v939_v21 }
 0x34a   :  { %797 = vmatmul.mubr.msk.bf16.gmra.mrb[12].mxu1 %vm178_vm1, %v948_v22 }
 0x415   :  { %v794_v23 = vpop.f32.mrb[8].mxu1 }
 0x416   :  { %578 = vst.msk [vmem:[%s1088_s5 + $0x10] sm:$0xff] %vm498_vm3, %v794_v23  ;;  %v545_v19 = vpop.f32.mrb[9].mxu1  ;;  %v586_v26 = vmul.f32 %v794_v23, %v794_v23 }
 0x417   :  { %576 = vst.msk [vmem:[%s1088_s5] sm:$0xff] %vm498_vm3, %v545_v19  ;;  %v584_v24 = vmul.f32 %v545_v19, %v545_v19  ;;  %v795_v20 = vpop.f32.mrb[10].mxu1 }
 0x418   :  { %579 = vst.msk [vmem:[%s1088_s5 + $0x18] sm:$0xff] %vm498_vm3, %v795_v20  ;;  %v548_v21 = vpop.f32.mrb[11].mxu1  ;;  %v587_v29 = vmul.f32 %v795_v20, %v795_v20 }
 0x419   :  { %577 = vst.msk [vmem:[%s1088_s5 + $0x8] sm:$0xff] %vm498_vm3, %v548_v21  ;;  %v585_v22 = vmul.f32 %v548_v21, %v548_v21  ;;  %600 = vrot.lane.b32.xlu0 %v584_v24, %s869_s12 }
 0x41b   :  { %602 = vrot.lane.b32.xlu1 %v585_v22, %s869_s12 }
 0x41d   :  { %604 = vrot.lane.b32.xlu0 %v586_v26, %s869_s12  ;;  %v798_v30 = vpop.f32.mrb[12].mxu1 }
 0x41e   :  { %582 = vst.msk [vmem:[%s1088_s5 + $0x30] sm:$0xff] %vm498_vm3, %v798_v30  ;;  %v561_v31 = vpop.f32.mrb[13].mxu1  ;;  %v590_v36 = vmul.f32 %v798_v30, %v798_v30 }
 0x41f   :  { %580 = vst.msk [vmem:[%s1088_s5 + $0x20] sm:$0xff] %vm498_vm3, %v561_v31  ;;  %v588_v32 = vmul.f32 %v561_v31, %v561_v31  ;;  %606 = vrot.lane.b32.xlu1 %v587_v29, %s869_s12  ;;  %v799_v33 = vpop.f32.mrb[14].mxu1 }
 0x420   :  { %583 = vst.msk [vmem:[%s1088_s5 + $0x38] sm:$0xff] %vm498_vm3, %v799_v33  ;;  %v564_v34 = vpop.f32.mrb[15].mxu1  ;;  %v591_v37 = vmul.f32 %v799_v33, %v799_v33 }
 0x421   :  { %581 = vst.msk [vmem:[%s1088_s5 + $0x28] sm:$0xff] %vm498_vm3, %v564_v34  ;;  %v589_v35 = vmul.f32 %v564_v34, %v564_v34  ;;  %608 = vrot.lane.b32.xlu0 %v588_v32, %s869_s12 }
 0x423   :  { %610 = vrot.lane.b32.xlu1 %v589_v35, %s869_s12 }
 0x425   :  { %612 = vrot.lane.b32.xlu0 %v590_v36, %s869_s12 }
 0x427   :  { %614 = vrot.lane.b32.xlu1 %v591_v37, %s869_s12 }
 0x48b   :  { %v601_v38 = vpop.permute.xlu0 %600 }
 0x48c   :  { %v624_v40 = vsel %vm498_vm3, %v601_v38, 0.0 }
 0x48d   :  { %v603_v39 = vpop.permute.xlu1 %602 }
 0x48e   :  { %v625_v41 = vsel %vm498_vm3, %v603_v39, 0.0 }
 0x48f   :  { %v626_v42 = vadd.f32 %v625_v41, %v624_v40  ;;  %v605_v43 = vpop.permute.xlu0 %604 }
 0x490   :  { %v627_v44 = vsel %vm498_vm3, %v605_v43, 0.0 }
 0x491   :  { %v628_v45 = vadd.f32 %v627_v44, %v626_v42  ;;  %v607_v46 = vpop.permute.xlu1 %606 }
 0x492   :  { %v629_v47 = vsel %vm498_vm3, %v607_v46, 0.0 }
 0x493   :  { %v630_v48 = vadd.f32 %v629_v47, %v628_v45  ;;  %v609_v49 = vpop.permute.xlu0 %608 }
 0x494   :  { %v631_v50 = vsel %vm498_vm3, %v609_v49, 0.0 }
 0x495   :  { %v632_v51 = vadd.f32 %v631_v50, %v630_v48  ;;  %v611_v52 = vpop.permute.xlu1 %610 }
 0x496   :  { %v633_v53 = vsel %vm498_vm3, %v611_v52, 0.0 }
 0x497   :  { %v634_v54 = vadd.f32 %v633_v53, %v632_v51  ;;  %v613_v55 = vpop.permute.xlu0 %612 }
 0x498   :  { %v635_v56 = vsel %vm498_vm3, %v613_v55, 0.0 }
 0x499   :  { %v636_v57 = vadd.f32 %v635_v56, %v634_v54  ;;  %v615_v58 = vpop.permute.xlu1 %614 }
 0x49a   :  { %v637_v59 = vsel %vm498_vm3, %v615_v58, 0.0 }
 0x49b   :  { %v638_v60 = vadd.f32 %v637_v59, %v636_v57 }
 0x49d   :  { %639 = vadd.xlane.f32.xlu0 %v638_v60 }
 0x52a   :  { %v640_v61 = vpop.xlane.xlu0 %639 }
 0x52b   :  { %v641_v62 = vrot.slane %v640_v61, 4 }
 0x52d   :  { %v642_v63 = vadd.f32 %v641_v62, %v640_v61 }
 0x52f   :  { %v643_v0 = vrot.slane %v642_v63, 2 }
 0x531   :  { %v644_v1 = vadd.f32 %v643_v0, %v642_v63 }
 0x533   :  { %v645_v2 = vrot.slane %v644_v1, 1 }
 0x535   :  { %v646_v3 = vadd.f32 %v645_v2, %v644_v1 }
 0x537   :  { %800 = vpush %v646_v3 }
 0x568   :  { %s801_s5 = spop %800 }
 0x569   :  { %v648_v4 = vstv %s801_s5 }
 0x56a   :  { %854 = vrsqrt.f32 %v648_v4  ;;  %vm651_vm4 = vcmp.eq.f32.partialorder %v648_v4, inf  ;;  %v654_v7 = vand.u32 2147483648, %v648_v4  ;;  %vm653_vm5 = vcmp.eq.f32.partialorder %v648_v4, 0.0 }
 0x574   :  { %v855_v5 = vpop.eup %854 }
 0x575   :  { %v650_v6 = vmul.f32 %v855_v5, %v648_v4 }
 0x577   :  { %v652_v8 = vsel %vm651_vm4, %v648_v4, %v650_v6 }
 0x578   :  { %v655_v9 = vsel %vm653_vm5, %v654_v7, %v652_v8 }
 0x579   :  { %802 = vpush %v655_v9 }
 0x5aa   :  { %s803_s21 = spop %802 }
 0x5ab   :  { %658 = sst [smem:[#allocation2]] %s803_s21 }
 0x5ac   :  { %865 = shalt.err (!%p862_p2)
}
 0x5ad   :  { %s870_s28 = smov [#allocation2]  }
 0x5ae   :  { %668 = dma.smem_to_hbm %s870_s28, 16, %s1089_s6, [#allocation3]  }
 0x5af   :  { %866 = dma.done.wait [#allocation3], 16  }
 0x5b0   :  { %867 = vsyncadd [#allocation3], 4294967280 }
 0x5b1   :  { %674 = sfence }
 0x5b2   :  { %675 = vsyncpa [#allocation3], 1 }

</bundles_post_ra>
